<compile_context>
chip_gen: v6e
topology: v6e:2x2x1
jax: 0.10.0
libtpu: 0.0.40
codegen_flags: <defaults>
</compile_context>

<pallas_src>
import functools

import jax
import jax.numpy as jnp
from jax import lax
from jax.experimental import pallas as pl
from jax.experimental.pallas import tpu as pltpu


LN_EPS = 1e-5          # torch.nn.LayerNorm default
LEAKY_SLOPE = 0.2      # nn.LeakyReLU(0.2)

IN_F = 784
HID = 200
OUT = 10
HID_PAD = 256          # 200 -> 256 lanes: real zeros instead of masked lanes
OUT_PAD = 128          # 10  -> 128 lanes: lane-dense (unmasked) output stores


def classifier_kernel(x_ref, w1_ref, b1_ref, gamma_ref, beta_ref,
                      w2_ref, b2_ref, o_ref):
    # ---- Linear(784 -> 200 [padded to 256]): bf16 operands, f32 accumulate.
    h = jnp.dot(x_ref[...], w1_ref[...],
                preferred_element_type=jnp.float32)            # (TB, 256) f32
    h = h + b1_ref[...]                                        # padded bias = 0

    # ---- LeakyReLU(0.2) in f32. Padded lanes stay exactly 0.
    h = jnp.where(h >= 0, h, LEAKY_SLOPE * h)

    # ---- LayerNorm(200): fused single-pass statistics.
    # Padded lanes are exactly zero, so sums over 256 lanes equal sums over the
    # real 200 features; divide by HID (200), not HID_PAD.
    s = jnp.sum(h, axis=-1, keepdims=True)
    s2 = jnp.sum(h * h, axis=-1, keepdims=True)
    mean = s * (1.0 / HID)
    var = s2 * (1.0 / HID) - mean * mean                       # biased, like torch
    inv = lax.rsqrt(var + LN_EPS)
    h_norm = (h - mean) * inv * gamma_ref[...] + beta_ref[...]
    # Padded lanes of h_norm are zeroed by gamma/beta padding, and the padded
    # rows of w2 are zero, so they cannot affect the logits.

    # ---- Linear(200 -> 10 [padded to 128]): bf16 operands, f32 accumulate.
    logits = jnp.dot(h_norm.astype(jnp.bfloat16), w2_ref[...],
                     preferred_element_type=jnp.float32)       # (TB, 128) f32
    logits = logits + b2_ref[...]

    # ---- Sigmoid, lane-dense (128-wide) store; real outputs are cols [:10].
    o_ref[...] = jax.nn.sigmoid(logits)


def _round_up(n, m):
    return ((n + m - 1) // m) * m


@functools.partial(jax.jit, static_argnames=("tb",))
def classifier_forward(x, w1, b1, gamma, beta, w2, b2, tb=1024):
    """x: (B, 784) f32. w1: (784, 200), b1/gamma/beta: (200,), w2: (200, 10),
    b2: (10,). Returns (B, 10) f32 probabilities."""
    B = x.shape[0]

    # bf16 matmul operands (halves HBM traffic for x, bf16-native MXU);
    # parameters zero-padded to lane-dense widths.
    x_bf = x.astype(jnp.bfloat16)
    w1p = jnp.pad(w1.astype(jnp.bfloat16), ((0, 0), (0, HID_PAD - HID)))
    b1p = jnp.pad(b1.astype(jnp.float32), (0, HID_PAD - HID)).reshape(1, HID_PAD)
    gammap = jnp.pad(gamma.astype(jnp.float32), (0, HID_PAD - HID)).reshape(1, HID_PAD)
    betap = jnp.pad(beta.astype(jnp.float32), (0, HID_PAD - HID)).reshape(1, HID_PAD)
    w2p = jnp.pad(w2.astype(jnp.bfloat16),
                  ((0, HID_PAD - HID), (0, OUT_PAD - OUT)))
    b2p = jnp.pad(b2.astype(jnp.float32), (0, OUT_PAD - OUT)).reshape(1, OUT_PAD)

    # Batch tile: multiple of 8 sublanes; never larger than needed.
    tb_eff = min(tb, _round_up(B, 8))
    grid = (pl.cdiv(B, tb_eff),)

    def resident(shape):
        return pl.BlockSpec(shape, lambda i: (0, 0))

    cost = pl.CostEstimate(
        flops=2 * B * IN_F * HID + 2 * B * HID * OUT,
        transcendentals=B * (HID + OUT),
        bytes_accessed=(x_bf.size * 2 + w1p.size * 2 + w2p.size * 2
                        + (b1p.size + gammap.size + betap.size + b2p.size) * 4
                        + B * OUT_PAD * 4),
    )

    out = pl.pallas_call(
        classifier_kernel,
        out_shape=jax.ShapeDtypeStruct((B, OUT_PAD), jnp.float32),
        grid=grid,
        in_specs=[
            pl.BlockSpec((tb_eff, IN_F), lambda i: (i, 0)),   # x: batch-tiled
            resident((IN_F, HID_PAD)),                        # w1 (resident)
            resident((1, HID_PAD)),                           # b1
            resident((1, HID_PAD)),                           # gamma
            resident((1, HID_PAD)),                           # beta
            resident((HID_PAD, OUT_PAD)),                     # w2 (resident)
            resident((1, OUT_PAD)),                           # b2
        ],
        out_specs=pl.BlockSpec((tb_eff, OUT_PAD), lambda i: (i, 0)),
        compiler_params=pltpu.CompilerParams(
            dimension_semantics=("parallel",),
            vmem_limit_bytes=48 * 1024 * 1024,
        ),
        cost_estimate=cost,
    )(x_bf, w1p, b1p, gammap, betap, w2p, b2p)

    return out[:, :OUT]


def init_params(key):
    """Deterministic init mimicking torch.nn.Linear defaults
    (uniform(-1/sqrt(fan_in), 1/sqrt(fan_in))) and LayerNorm (ones/zeros).
    Linear weights are stored pre-transposed as (in, out)."""
    k1, k2, k3, k4 = jax.random.split(key, 4)
    bound1 = 1.0 / jnp.sqrt(float(IN_F))
    w1 = jax.random.uniform(k1, (IN_F, HID), jnp.float32, -bound1, bound1)
    b1 = jax.random.uniform(k2, (HID,), jnp.float32, -bound1, bound1)
    gamma = jnp.ones((HID,), jnp.float32)
    beta = jnp.zeros((HID,), jnp.float32)
    bound2 = 1.0 / jnp.sqrt(float(HID))
    w2 = jax.random.uniform(k3, (HID, OUT), jnp.float32, -bound2, bound2)
    b2 = jax.random.uniform(k4, (OUT,), jnp.float32, -bound2, bound2)
    return w1, b1, gamma, beta, w2, b2


def reference_forward(x, w1, b1, gamma, beta, w2, b2):
    """Pure-JAX f32 reference matching the torch module semantics."""
    h = x @ w1 + b1
    h = jnp.where(h >= 0, h, LEAKY_SLOPE * h)
    mean = jnp.mean(h, axis=-1, keepdims=True)
    var = jnp.mean((h - mean) ** 2, axis=-1, keepdims=True)
    h = (h - mean) / jnp.sqrt(var + LN_EPS) * gamma + beta
    return jax.nn.sigmoid(h @ w2 + b2)


# TODO(synk): training step (BCELoss + Adam + backward) is outside the forward
# pass and is not implemented as a Pallas kernel.

if __name__ == "__main__":
    key = jax.random.PRNGKey(0)
    kx, kp = jax.random.split(key)
    params = init_params(kp)

    # Small case: single batch tile.
    B = 16
    x = jax.random.normal(kx, (B, IN_F), jnp.float32)
    out = jax.block_until_ready(classifier_forward(x, *params))
    ref = reference_forward(x, *params)
    assert out.shape == (B, OUT)
    assert jnp.allclose(out, ref, atol=2e-2), float(jnp.max(jnp.abs(out - ref)))

    # Multi-tile case: exercises the batch grid / resident-weight pipelining.
    B2 = 64
    x2 = jax.random.normal(kx, (B2, IN_F), jnp.float32)
    out2 = jax.block_until_ready(classifier_forward(x2, *params, tb=16))
    ref2 = reference_forward(x2, *params)
    assert out2.shape == (B2, OUT)
    assert jnp.allclose(out2, ref2, atol=2e-2), float(jnp.max(jnp.abs(out2 - ref2)))

    print("KERNEL_OK")
</pallas_src>

<mosaic_0001>
module attributes {stable_mosaic.version = 11 : i64} {
  func.func @classifier_kernel(%arg0: i32, %arg1: memref<16x784xbf16, #tpu.memory_space<vmem>>, %arg2: memref<784x256xbf16, #tpu.memory_space<vmem>>, %arg3: memref<1x256xf32, #tpu.memory_space<vmem>>, %arg4: memref<1x256xf32, #tpu.memory_space<vmem>>, %arg5: memref<1x256xf32, #tpu.memory_space<vmem>>, %arg6: memref<256x128xbf16, #tpu.memory_space<vmem>>, %arg7: memref<1x128xf32, #tpu.memory_space<vmem>>, %arg8: memref<16x128xf32, #tpu.memory_space<vmem>>) attributes {dimension_semantics = [#tpu.dimension_semantics<parallel>], iteration_bounds = array<i64: 1>, scalar_prefetch = 0 : i64, scratch_operands = 0 : i64, tpu.core_type = #tpu.core_type<tc>, window_params = [{transform_indices = @transform_0, window_bounds = array<i64: 16, 784>}, {pipeline_mode = #tpu.pipeline_mode<synchronous>, transform_indices = @transform_1, window_bounds = array<i64: 784, 256>}, {pipeline_mode = #tpu.pipeline_mode<synchronous>, transform_indices = @transform_2, window_bounds = array<i64: 1, 256>}, {pipeline_mode = #tpu.pipeline_mode<synchronous>, transform_indices = @transform_3, window_bounds = array<i64: 1, 256>}, {pipeline_mode = #tpu.pipeline_mode<synchronous>, transform_indices = @transform_4, window_bounds = array<i64: 1, 256>}, {pipeline_mode = #tpu.pipeline_mode<synchronous>, transform_indices = @transform_5, window_bounds = array<i64: 256, 128>}, {pipeline_mode = #tpu.pipeline_mode<synchronous>, transform_indices = @transform_6, window_bounds = array<i64: 1, 128>}, {transform_indices = @transform_7, window_bounds = array<i64: 16, 128>}]} {
    %c0 = arith.constant 0 : index
    %c0_0 = arith.constant 0 : index
    %0 = vector.load %arg1[%c0, %c0_0] : memref<16x784xbf16, #tpu.memory_space<vmem>>, vector<16x784xbf16>
    %c0_1 = arith.constant 0 : index
    %c0_2 = arith.constant 0 : index
    %1 = vector.load %arg2[%c0_1, %c0_2] : memref<784x256xbf16, #tpu.memory_space<vmem>>, vector<784x256xbf16>
    %cst = arith.constant dense<0.000000e+00> : vector<16x256xf32>
    %2 = tpu.matmul %0, %1, %cst {dimension_numbers = #tpu.dot_dimension_numbers<[1], [0], [0], [1], [0, 0, 1, 1], [], []>} : vector<16x784xbf16>, vector<784x256xbf16>, vector<16x256xf32> -> vector<16x256xf32>
    %c0_3 = arith.constant 0 : index
    %c0_4 = arith.constant 0 : index
    %3 = vector.load %arg3[%c0_3, %c0_4] : memref<1x256xf32, #tpu.memory_space<vmem>>, vector<1x256xf32>
    %4 = vector.broadcast %3 : vector<1x256xf32> to vector<16x256xf32>
    %5 = arith.addf %2, %4 : vector<16x256xf32>
    %cst_5 = arith.constant 0.000000e+00 : f32
    %6 = vector.broadcast %cst_5 : f32 to vector<16x256xf32>
    %7 = arith.cmpf oge, %5, %6 : vector<16x256xf32>
    %cst_6 = arith.constant 2.000000e-01 : f32
    %8 = vector.broadcast %cst_6 : f32 to vector<16x256xf32>
    %9 = arith.mulf %8, %5 : vector<16x256xf32>
    %10 = arith.select %7, %5, %9 : vector<16x256xi1>, vector<16x256xf32>
    %cst_7 = arith.constant dense<0.000000e+00> : vector<16xf32>
    %11 = vector.multi_reduction <add>, %10, %cst_7 [1] : vector<16x256xf32> to vector<16xf32>
    %12 = vector.shape_cast %11 : vector<16xf32> to vector<16x1xf32>
    %13 = arith.mulf %10, %10 : vector<16x256xf32>
    %cst_8 = arith.constant dense<0.000000e+00> : vector<16xf32>
    %14 = vector.multi_reduction <add>, %13, %cst_8 [1] : vector<16x256xf32> to vector<16xf32>
    %15 = vector.shape_cast %14 : vector<16xf32> to vector<16x1xf32>
    %cst_9 = arith.constant 5.000000e-03 : f32
    %16 = vector.broadcast %cst_9 : f32 to vector<16x1xf32>
    %17 = arith.mulf %12, %16 : vector<16x1xf32>
    %cst_10 = arith.constant 5.000000e-03 : f32
    %18 = vector.broadcast %cst_10 : f32 to vector<16x1xf32>
    %19 = arith.mulf %15, %18 : vector<16x1xf32>
    %20 = arith.mulf %17, %17 : vector<16x1xf32>
    %21 = arith.subf %19, %20 : vector<16x1xf32>
    %cst_11 = arith.constant 9.99999974E-6 : f32
    %22 = vector.broadcast %cst_11 : f32 to vector<16x1xf32>
    %23 = arith.addf %21, %22 : vector<16x1xf32>
    %24 = math.rsqrt %23 : vector<16x1xf32>
    %25 = vector.broadcast %17 : vector<16x1xf32> to vector<16x256xf32>
    %26 = arith.subf %10, %25 : vector<16x256xf32>
    %27 = vector.broadcast %24 : vector<16x1xf32> to vector<16x256xf32>
    %28 = arith.mulf %26, %27 : vector<16x256xf32>
    %c0_12 = arith.constant 0 : index
    %c0_13 = arith.constant 0 : index
    %29 = vector.load %arg4[%c0_12, %c0_13] : memref<1x256xf32, #tpu.memory_space<vmem>>, vector<1x256xf32>
    %30 = vector.broadcast %29 : vector<1x256xf32> to vector<16x256xf32>
    %31 = arith.mulf %28, %30 : vector<16x256xf32>
    %c0_14 = arith.constant 0 : index
    %c0_15 = arith.constant 0 : index
    %32 = vector.load %arg5[%c0_14, %c0_15] : memref<1x256xf32, #tpu.memory_space<vmem>>, vector<1x256xf32>
    %33 = vector.broadcast %32 : vector<1x256xf32> to vector<16x256xf32>
    %34 = arith.addf %31, %33 : vector<16x256xf32>
    %35 = arith.truncf %34 : vector<16x256xf32> to vector<16x256xbf16>
    %c0_16 = arith.constant 0 : index
    %c0_17 = arith.constant 0 : index
    %36 = vector.load %arg6[%c0_16, %c0_17] : memref<256x128xbf16, #tpu.memory_space<vmem>>, vector<256x128xbf16>
    %cst_18 = arith.constant dense<0.000000e+00> : vector<16x128xf32>
    %37 = tpu.matmul %35, %36, %cst_18 {dimension_numbers = #tpu.dot_dimension_numbers<[1], [0], [0], [1], [0, 0, 1, 1], [], []>} : vector<16x256xbf16>, vector<256x128xbf16>, vector<16x128xf32> -> vector<16x128xf32>
    %c0_19 = arith.constant 0 : index
    %c0_20 = arith.constant 0 : index
    %38 = vector.load %arg7[%c0_19, %c0_20] : memref<1x128xf32, #tpu.memory_space<vmem>>, vector<1x128xf32>
    %39 = vector.broadcast %38 : vector<1x128xf32> to vector<16x128xf32>
    %40 = arith.addf %37, %39 : vector<16x128xf32>
    %41 = arith.negf %40 : vector<16x128xf32>
    %42 = math.exp %41 : vector<16x128xf32>
    %cst_21 = arith.constant 1.000000e+00 : f32
    %43 = vector.broadcast %cst_21 : f32 to vector<16x128xf32>
    %44 = arith.addf %43, %42 : vector<16x128xf32>
    %45 = arith.divf %43, %44 : vector<16x128xf32>
    %c0_22 = arith.constant 0 : index
    %c0_23 = arith.constant 0 : index
    %46 = vector.load %arg8[%c0_22, %c0_23] : memref<16x128xf32, #tpu.memory_space<vmem>>, vector<16x128xf32>
    tpu.vector_store %arg8[%c0_22, %c0_23], %45 {strides = array<i32>} : memref<16x128xf32, #tpu.memory_space<vmem>>, vector<16x128xf32>,
    return
  }
  func.func @transform_0(%arg0: i32) -> (i32, i32) {
    %c0_i32 = arith.constant 0 : i32
    %c0_i32_0 = arith.constant 0 : i32
    return %arg0, %c0_i32 : i32, i32
  }
  func.func @transform_1(%arg0: i32) -> (i32, i32) {
    %c0_i32 = arith.constant 0 : i32
    %c0_i32_0 = arith.constant 0 : i32
    %c0_i32_1 = arith.constant 0 : i32
    return %c0_i32, %c0_i32_0 : i32, i32
  }
  func.func @transform_2(%arg0: i32) -> (i32, i32) {
    %c0_i32 = arith.constant 0 : i32
    %c0_i32_0 = arith.constant 0 : i32
    %c0_i32_1 = arith.constant 0 : i32
    return %c0_i32, %c0_i32_0 : i32, i32
  }
  func.func @transform_3(%arg0: i32) -> (i32, i32) {
    %c0_i32 = arith.constant 0 : i32
    %c0_i32_0 = arith.constant 0 : i32
    %c0_i32_1 = arith.constant 0 : i32
    return %c0_i32, %c0_i32_0 : i32, i32
  }
  func.func @transform_4(%arg0: i32) -> (i32, i32) {
    %c0_i32 = arith.constant 0 : i32
    %c0_i32_0 = arith.constant 0 : i32
    %c0_i32_1 = arith.constant 0 : i32
    return %c0_i32, %c0_i32_0 : i32, i32
  }
  func.func @transform_5(%arg0: i32) -> (i32, i32) {
    %c0_i32 = arith.constant 0 : i32
    %c0_i32_0 = arith.constant 0 : i32
    %c0_i32_1 = arith.constant 0 : i32
    return %c0_i32, %c0_i32_0 : i32, i32
  }
  func.func @transform_6(%arg0: i32) -> (i32, i32) {
    %c0_i32 = arith.constant 0 : i32
    %c0_i32_0 = arith.constant 0 : i32
    %c0_i32_1 = arith.constant 0 : i32
    return %c0_i32, %c0_i32_0 : i32, i32
  }
  func.func @transform_7(%arg0: i32) -> (i32, i32) {
    %c0_i32 = arith.constant 0 : i32
    %c0_i32_0 = arith.constant 0 : i32
    return %arg0, %c0_i32 : i32, i32
  }
}

</mosaic_0001>

<bundles_post_ra>
// kernel: classifier_forward.1
= control target key start
LH: loop header
LB: loop body
LE: loop exit
PB: predicated region body
PF: predicated region fallthrough
CT: control target
= control target key end

     0   :  { %vm671_vm0 = vcmask 130048   ;;  %s1949_s0 = inlined_call_operand.vmem [shape: bf16[16,784], index: 0, kind: input, shape index: {}]   ;;  %s1950_s1 = inlined_call_operand.vmem [shape: bf16[784,256], index: 1, kind: input, shape index: {}]   ;;  %s1951_s2 = inlined_call_operand.vmem [shape: f32[1,256], index: 2, kind: input, shape index: {}]   ;;  %s1952_s3 = inlined_call_operand.vmem [shape: f32[1,256], index: 3, kind: input, shape index: {}]   ;;  %s1953_s4 = inlined_call_operand.vmem [shape: f32[1,256], index: 4, kind: input, shape index: {}]   ;;  %s1954_s5 = inlined_call_operand.vmem [shape: bf16[256,128], index: 5, kind: input, shape index: {}]   ;;  %s1955_s6 = inlined_call_operand.vmem [shape: f32[1,128], index: 6, kind: input, shape index: {}]   ;;  %s1956_s7 = inlined_call_operand.hbm [shape: f32[16,128], index: 7, kind: output, shape index: {}]  }
   0x1   :  { %v1286_v0 = vld [vmem:[%s1950_s1 + $0x74] ss:$8 sps:$4 sm:$0xff]   ;;  %v1288_v1 = vld [vmem:[%s1950_s1 + $0x70] ss:$8 sps:$4 sm:$0xff]   ;;  %v1292_v4 = vld [vmem:[%s1950_s1 + $0x64] ss:$8 sps:$4 sm:$0xff]  }
   0x2   :  { %675 = vmatprep.subr.bf16.mxu0 %v1286_v0  ;;  %v1289_v2 = vld [vmem:[%s1950_s1 + $0x174] ss:$8 sps:$4 sm:$0xff]   ;;  %v1291_v3 = vld [vmem:[%s1950_s1 + $0x170] ss:$8 sps:$4 sm:$0xff]   ;;  %v1294_v5 = vld [vmem:[%s1950_s1 + $0x60] ss:$8 sps:$4 sm:$0xff]  }
   0x3   :  { %676 = vmatpush1.bf16.msra.mxu0 %v1288_v1  ;;  %718 = vmatprep.subr.bf16.mxu1 %v1289_v2  ;;  %v1295_v6 = vld [vmem:[%s1950_s1 + $0x164] ss:$8 sps:$4 sm:$0xff]   ;;  %v1297_v7 = vld [vmem:[%s1950_s1 + $0x160] ss:$8 sps:$4 sm:$0xff]   ;;  %v1298_v8 = vld [vmem:[%s1950_s1 + $0x54] ss:$8 sps:$4 sm:$0xff]  }
   0x4   :  { %719 = vmatpush1.bf16.msra.mxu1 %v1291_v3  ;;  %677 = vmatprep.subr.bf16.mxu0 %v1292_v4  ;;  %v1300_v9 = vld [vmem:[%s1950_s1 + $0x50] ss:$8 sps:$4 sm:$0xff]   ;;  %v1301_v10 = vld [vmem:[%s1950_s1 + $0x154] ss:$8 sps:$4 sm:$0xff]   ;;  %v1304_v11 = vld [vmem:[%s1950_s1 + $0x44] ss:$8 sps:$4 sm:$0xff]  }
   0x5   :  { %720 = vmatprep.subr.bf16.mxu1 %v1295_v6  ;;  %v1303_v12 = vld [vmem:[%s1950_s1 + $0x150] ss:$8 sps:$4 sm:$0xff]   ;;  %v1307_v13 = vld [vmem:[%s1950_s1 + $0x144] ss:$8 sps:$4 sm:$0xff]   ;;  %v1306_v14 = vld [vmem:[%s1950_s1 + $0x40] ss:$8 sps:$4 sm:$0xff]  }
   0x6   :  { %v1310_v15 = vld [vmem:[%s1950_s1 + $0x34] ss:$8 sps:$4 sm:$0xff]   ;;  %v1309_v16 = vld [vmem:[%s1950_s1 + $0x140] ss:$8 sps:$4 sm:$0xff]   ;;  %v1312_v18 = vld [vmem:[%s1950_s1 + $0x30] ss:$8 sps:$4 sm:$0xff]  }
   0x7   :  { %678 = vmatpush1.bf16.msra.mxu0 %v1294_v5  ;;  %v1313_v17 = vld [vmem:[%s1950_s1 + $0x134] ss:$8 sps:$4 sm:$0xff]   ;;  %v1316_v19 = vld [vmem:[%s1950_s1 + $0x24] ss:$8 sps:$4 sm:$0xff]   ;;  %v1315_v20 = vld [vmem:[%s1950_s1 + $0x130] ss:$8 sps:$4 sm:$0xff]  }
   0x8   :  { %679 = vmatprep.subr.bf16.mxu0 %v1298_v8  ;;  %721 = vmatpush1.bf16.msra.mxu1 %v1297_v7  ;;  %v1319_v21 = vld [vmem:[%s1950_s1 + $0x124] ss:$8 sps:$4 sm:$0xff]   ;;  %v1318_v22 = vld [vmem:[%s1950_s1 + $0x20] ss:$8 sps:$4 sm:$0xff]   ;;  %v1322_v23 = vld [vmem:[%s1950_s1 + $0x14] ss:$8 sps:$4 sm:$0xff]  }
   0x9   :  { %722 = vmatprep.subr.bf16.mxu1 %v1301_v10  ;;  %v1321_v24 = vld [vmem:[%s1950_s1 + $0x120] ss:$8 sps:$4 sm:$0xff]   ;;  %v1325_v25 = vld [vmem:[%s1950_s1 + $0x114] ss:$8 sps:$4 sm:$0xff]   ;;  %v1324_v26 = vld [vmem:[%s1950_s1 + $0x10] ss:$8 sps:$4 sm:$0xff]  }
   0xa   :  { %v1328_v27 = vld [vmem:[%s1950_s1 + $0x4] ss:$8 sps:$4 sm:$0xff]   ;;  %v1327_v28 = vld [vmem:[%s1950_s1 + $0x110] ss:$8 sps:$4 sm:$0xff]   ;;  %v1330_v30 = vld [vmem:[%s1950_s1] ss:$8 sps:$4 sm:$0xff]  }
   0xb   :  { %680 = vmatpush1.bf16.msra.mxu0 %v1300_v9  ;;  %v1331_v29 = vld [vmem:[%s1950_s1 + $0x104] ss:$8 sps:$4 sm:$0xff]   ;;  %v1334_v31 = vld [vmem:[%s1950_s1 + $0xf4] ss:$8 sps:$4 sm:$0xff]   ;;  %v1333_v32 = vld [vmem:[%s1950_s1 + $0x100] ss:$8 sps:$4 sm:$0xff]  }
   0xc   :  { %681 = vmatprep.subr.bf16.mxu0 %v1304_v11  ;;  %723 = vmatpush1.bf16.msra.mxu1 %v1303_v12  ;;  %v1337_v33 = vld [vmem:[%s1950_s1 + $0x1f4] ss:$8 sps:$4 sm:$0xff]   ;;  %v1336_v34 = vld [vmem:[%s1950_s1 + $0xf0] ss:$8 sps:$4 sm:$0xff]   ;;  %v1340_v35 = vld [vmem:[%s1950_s1 + $0xe4] ss:$8 sps:$4 sm:$0xff]  }
   0xd   :  { %724 = vmatprep.subr.bf16.mxu1 %v1307_v13  ;;  %v1339_v36 = vld [vmem:[%s1950_s1 + $0x1f0] ss:$8 sps:$4 sm:$0xff]   ;;  %v1343_v37 = vld [vmem:[%s1950_s1 + $0x1e4] ss:$8 sps:$4 sm:$0xff]   ;;  %v1342_v38 = vld [vmem:[%s1950_s1 + $0xe0] ss:$8 sps:$4 sm:$0xff]  }
   0xe   :  { %v1346_v39 = vld [vmem:[%s1950_s1 + $0xd4] ss:$8 sps:$4 sm:$0xff]   ;;  %v1345_v40 = vld [vmem:[%s1950_s1 + $0x1e0] ss:$8 sps:$4 sm:$0xff]   ;;  %v1348_v42 = vld [vmem:[%s1950_s1 + $0xd0] ss:$8 sps:$4 sm:$0xff]  }
   0xf   :  { %682 = vmatpush1.bf16.msra.mxu0 %v1306_v14  ;;  %v1349_v41 = vld [vmem:[%s1950_s1 + $0x1d4] ss:$8 sps:$4 sm:$0xff]   ;;  %v1352_v43 = vld [vmem:[%s1950_s1 + $0xc4] ss:$8 sps:$4 sm:$0xff]   ;;  %v1351_v44 = vld [vmem:[%s1950_s1 + $0x1d0] ss:$8 sps:$4 sm:$0xff]  }
  0x10   :  { %683 = vmatprep.subr.bf16.mxu0 %v1310_v15  ;;  %725 = vmatpush1.bf16.msra.mxu1 %v1309_v16  ;;  %v1355_v45 = vld [vmem:[%s1950_s1 + $0x1c4] ss:$8 sps:$4 sm:$0xff]   ;;  %v1354_v46 = vld [vmem:[%s1950_s1 + $0xc0] ss:$8 sps:$4 sm:$0xff]   ;;  %v1358_v48 = vld [vmem:[%s1950_s1 + $0xb4] ss:$8 sps:$4 sm:$0xff]  }
  0x11   :  { %726 = vmatprep.subr.bf16.mxu1 %v1313_v17  ;;  %v1383_v47 = vld [vmem:[%s1949_s0 + $0x4] ss:$28 sps:$4 sm:$0xff]   ;;  %v1361_v50 = vld [vmem:[%s1950_s1 + $0x1b4] ss:$8 sps:$4 sm:$0xff]   ;;  %v1390_v51 = vld [vmem:[%s1949_s0 + $0xc] ss:$28 sps:$4 sm:$0xff]  }
  0x12   :  { %v1357_v49 = vld [vmem:[%s1950_s1 + $0x1c0] ss:$8 sps:$4 sm:$0xff]   ;;  %707 = vmatprep.mubr.bf16.mxu0 %v1383_v47  ;;  %v1360_v52 = vld [vmem:[%s1950_s1 + $0xb0] ss:$8 sps:$4 sm:$0xff]   ;;  %v1364_v53 = vld [vmem:[%s1950_s1 + $0xa4] ss:$8 sps:$4 sm:$0xff]   ;;  %750 = vmatprep.mubr.bf16.mxu1 %v1390_v51 }
  0x13   :  { %684 = vmatpush1.bf16.msra.mxu0 %v1312_v18  ;;  %v1363_v54 = vld [vmem:[%s1950_s1 + $0x1b0] ss:$8 sps:$4 sm:$0xff]   ;;  %v1367_v55 = vld [vmem:[%s1950_s1 + $0x1a4] ss:$8 sps:$4 sm:$0xff]   ;;  %v1366_v56 = vld [vmem:[%s1950_s1 + $0xa0] ss:$8 sps:$4 sm:$0xff]  }
  0x14   :  { %685 = vmatprep.subr.bf16.mxu0 %v1316_v19  ;;  %727 = vmatpush1.bf16.msra.mxu1 %v1315_v20  ;;  %v1370_v57 = vld [vmem:[%s1950_s1 + $0x94] ss:$8 sps:$4 sm:$0xff]   ;;  %v1369_v58 = vld [vmem:[%s1950_s1 + $0x1a0] ss:$8 sps:$4 sm:$0xff]   ;;  %v1372_v60 = vld [vmem:[%s1950_s1 + $0x90] ss:$8 sps:$4 sm:$0xff]  }
  0x15   :  { %728 = vmatprep.subr.bf16.mxu1 %v1319_v21  ;;  %v1373_v59 = vld [vmem:[%s1950_s1 + $0x194] ss:$8 sps:$4 sm:$0xff]   ;;  %v1376_v61 = vld [vmem:[%s1950_s1 + $0x84] ss:$8 sps:$4 sm:$0xff]   ;;  %v1375_v62 = vld [vmem:[%s1950_s1 + $0x190] ss:$8 sps:$4 sm:$0xff]  }
  0x16   :  { %v1379_v63 = vld [vmem:[%s1950_s1 + $0x184] ss:$8 sps:$4 sm:$0xff]   ;;  %v1378_v0 = vld [vmem:[%s1950_s1 + $0x80] ss:$8 sps:$4 sm:$0xff]   ;;  %v1387_v1 = vld [vmem:[%s1950_s1 + $0x274] ss:$8 sps:$4 sm:$0xff]  }
  0x17   :  { %686 = vmatpush1.bf16.msra.mxu0 %v1318_v22  ;;  %v1384_v2 = vld [vmem:[%s1950_s1 + $0x180] ss:$8 sps:$4 sm:$0xff]   ;;  %v1385_v4 = vld [vmem:[%s1950_s1 + $0x270] ss:$8 sps:$4 sm:$0xff]   ;;  %v1393_v6 = vld [vmem:[%s1950_s1 + $0x264] ss:$8 sps:$4 sm:$0xff]  }
  0x18   :  { %687 = vmatprep.subr.bf16.mxu0 %v1322_v23  ;;  %729 = vmatpush1.bf16.msra.mxu1 %v1321_v24  ;;  %v1381_v3 = vld [vmem:[%s1949_s0] ss:$28 sps:$4 sm:$0xff]   ;;  %v1388_v5 = vld [vmem:[%s1949_s0 + $0x8] ss:$28 sps:$4 sm:$0xff]   ;;  %v1394_v11 = vld [vmem:[%s1950_s1 + $0x250] ss:$8 sps:$4 sm:$0xff]  }
  0x19   :  { %730 = vmatprep.subr.bf16.mxu1 %v1325_v25  ;;  %v1433_v7 = vld [vmem:[%s1950_s1 + $0x300] ss:$8 sps:$4 sm:$0xff]   ;;  %v1435_v8 = vld [vmem:[%s1950_s1 + $0x304] ss:$8 sps:$4 sm:$0xff]   ;;  %v1396_v10 = vld [vmem:[%s1950_s1 + $0x254] ss:$8 sps:$4 sm:$0xff]  }
  0x1a   :  { %v1391_v9 = vld [vmem:[%s1950_s1 + $0x260] ss:$8 sps:$4 sm:$0xff]   ;;  %v1493_v12 = vmov 0   ;;  %v1399_v13 = vld [vmem:[%s1950_s1 + $0x244] ss:$8 sps:$4 sm:$0xff]  }
  0x1b   :  { %688 = vmatpush1.bf16.msra.mxu0 %v1324_v26  ;;  %v1439_v14 = vld [vmem:[%s1949_s0 + $0x18] ss:$28 sps:$4 sm:$0xff]   ;;  %v1397_v16 = vld [vmem:[%s1950_s1 + $0x240] ss:$8 sps:$4 sm:$0xff]   ;;  %v1405_v19 = vld [vmem:[%s1950_s1 + $0x224] ss:$8 sps:$4 sm:$0xff]  }
  0x1c   :  { %689 = vmatprep.subr.bf16.mxu0 %v1328_v27  ;;  %731 = vmatpush1.bf16.msra.mxu1 %v1327_v28  ;;  %v1442_v15 = vld [vmem:[%s1949_s0 + $0x14] ss:$28 sps:$4 sm:$0xff]  }
  0x1d   :  { %732 = vmatprep.subr.bf16.mxu1 %v1331_v29  ;;  %v1402_v17 = vld [vmem:[%s1950_s1 + $0x234] ss:$8 sps:$4 sm:$0xff]   ;;  %v1400_v18 = vld [vmem:[%s1950_s1 + $0x230] ss:$8 sps:$4 sm:$0xff]  }
  0x1f   :  { %690 = vmatpush1.bf16.msra.mxu0 %v1330_v30 }
  0x20   :  { %691 = vmatprep.subr.bf16.mxu0 %v1334_v31  ;;  %733 = vmatpush1.bf16.msra.mxu1 %v1333_v32 }
  0x21   :  { %734 = vmatprep.subr.bf16.mxu1 %v1337_v33 }
  0x23   :  { %692 = vmatpush2.bf16.msra.mxu0 %v1336_v34 }
  0x24   :  { %693 = vmatprep.subr.bf16.mxu0 %v1340_v35  ;;  %735 = vmatpush2.bf16.msra.mxu1 %v1339_v36 }
  0x25   :  { %736 = vmatprep.subr.bf16.mxu1 %v1343_v37 }
  0x27   :  { %694 = vmatpush2.bf16.msra.mxu0 %v1342_v38 }
  0x28   :  { %695 = vmatprep.subr.bf16.mxu0 %v1346_v39  ;;  %737 = vmatpush2.bf16.msra.mxu1 %v1345_v40 }
  0x29   :  { %738 = vmatprep.subr.bf16.mxu1 %v1349_v41 }
  0x2b   :  { %696 = vmatpush2.bf16.msra.mxu0 %v1348_v42 }
  0x2c   :  { %697 = vmatprep.subr.bf16.mxu0 %v1352_v43  ;;  %739 = vmatpush2.bf16.msra.mxu1 %v1351_v44 }
  0x2d   :  { %740 = vmatprep.subr.bf16.mxu1 %v1355_v45 }
  0x2f   :  { %698 = vmatpush2.bf16.msra.mxu0 %v1354_v46 }
  0x30   :  { %699 = vmatprep.subr.bf16.mxu0 %v1358_v48  ;;  %741 = vmatpush2.bf16.msra.mxu1 %v1357_v49 }
  0x31   :  { %742 = vmatprep.subr.bf16.mxu1 %v1361_v50 }
  0x33   :  { %700 = vmatpush2.bf16.msra.mxu0 %v1360_v52 }
  0x34   :  { %701 = vmatprep.subr.bf16.mxu0 %v1364_v53  ;;  %743 = vmatpush2.bf16.msra.mxu1 %v1363_v54 }
  0x35   :  { %744 = vmatprep.subr.bf16.mxu1 %v1367_v55 }
  0x37   :  { %702 = vmatpush2.bf16.msra.mxu0 %v1366_v56 }
  0x38   :  { %703 = vmatprep.subr.bf16.mxu0 %v1370_v57  ;;  %745 = vmatpush2.bf16.msra.mxu1 %v1369_v58 }
  0x39   :  { %746 = vmatprep.subr.bf16.mxu1 %v1373_v59 }
  0x3b   :  { %704 = vmatpush2.bf16.msra.mxu0 %v1372_v60 }
  0x3c   :  { %705 = vmatprep.subr.bf16.mxu0 %v1376_v61  ;;  %747 = vmatpush2.bf16.msra.mxu1 %v1375_v62 }
  0x3d   :  { %748 = vmatprep.subr.bf16.mxu1 %v1379_v63 }
  0x3f   :  { %706 = vmatpush2.bf16.msra.mxu0 %v1378_v0 }
  0x40   :  { %761 = vmatprep.subr.bf16.mxu0 %v1387_v1  ;;  %749 = vmatpush2.bf16.msra.mxu1 %v1384_v2 }
  0x41   :  { %818 = vmatprep.subr.bf16.mxu1 %v1435_v8 }
  0x42   :  { %708 = vmatmul.mubr.bf16.vlgmr.msra.gmra.mxu0 %v1381_v3 }
  0x43   :  { %762 = vmatpush1.bf16.msra.mxu0 %v1385_v4  ;;  %751 = vmatmul.mubr.bf16.vlgmr.msra.gmra.mxu1 %v1388_v5 }
  0x44   :  { %763 = vmatprep.subr.bf16.mxu0 %v1393_v6  ;;  %836 = vmatprep.mubr.bf16.mxu1 %v1493_v12 }
  0x45   :  { %819 = vmatpush1.bf16.msra.mxu1 %v1433_v7  ;;  %793 = vmatprep.mubr.bf16.mxu0 %v1442_v15 }
  0x47   :  { %764 = vmatpush1.bf16.msra.mxu0 %v1391_v9 }
  0x48   :  { %765 = vmatprep.subr.bf16.mxu0 %v1396_v10 }
  0x4b   :  { %766 = vmatpush1.bf16.msra.mxu0 %v1394_v11  ;;  %1240 = vmatmul.mubr.msk.bf16.vlgmr.msra.gmra.mxu1 %vm671_vm0, %v1439_v14 }
  0x4c   :  { %767 = vmatprep.subr.bf16.mxu0 %v1399_v13 }
  0x4f   :  { %768 = vmatpush1.bf16.msra.mxu0 %v1397_v16 }
  0x50   :  { %769 = vmatprep.subr.bf16.mxu0 %v1402_v17 }
  0x51   :  { %12 = vsyncpa [#allocation3], 0  ;;  %v1403_v20 = vld [vmem:[%s1950_s1 + $0x220] ss:$8 sps:$4 sm:$0xff]   ;;  %v1408_v21 = vld [vmem:[%s1950_s1 + $0x214] ss:$8 sps:$4 sm:$0xff]   ;;  %v136_v42 = vlaneseq }
  0x52   :  { %v1406_v22 = vld [vmem:[%s1950_s1 + $0x210] ss:$8 sps:$4 sm:$0xff]   ;;  %v1411_v23 = vld [vmem:[%s1950_s1 + $0x204] ss:$8 sps:$4 sm:$0xff]   ;;  %v1409_v24 = vld [vmem:[%s1950_s1 + $0x200] ss:$8 sps:$4 sm:$0xff]  }
  0x53   :  { %770 = vmatpush1.bf16.msra.mxu0 %v1400_v18  ;;  %v1414_v25 = vld [vmem:[%s1950_s1 + $0x2f4] ss:$8 sps:$4 sm:$0xff]   ;;  %v1412_v26 = vld [vmem:[%s1950_s1 + $0x2f0] ss:$8 sps:$4 sm:$0xff]   ;;  %v1417_v27 = vld [vmem:[%s1950_s1 + $0x2e4] ss:$8 sps:$4 sm:$0xff]  }
  0x54   :  { %771 = vmatprep.subr.bf16.mxu0 %v1405_v19  ;;  %v1415_v28 = vld [vmem:[%s1950_s1 + $0x2e0] ss:$8 sps:$4 sm:$0xff]   ;;  %v1420_v29 = vld [vmem:[%s1950_s1 + $0x2d4] ss:$8 sps:$4 sm:$0xff]   ;;  %v1418_v30 = vld [vmem:[%s1950_s1 + $0x2d0] ss:$8 sps:$4 sm:$0xff]  }
  0x55   :  { %v1423_v31 = vld [vmem:[%s1950_s1 + $0x2c4] ss:$8 sps:$4 sm:$0xff]   ;;  %v1421_v32 = vld [vmem:[%s1950_s1 + $0x2c0] ss:$8 sps:$4 sm:$0xff]   ;;  %v1426_v33 = vld [vmem:[%s1950_s1 + $0x2b4] ss:$8 sps:$4 sm:$0xff]  }
  0x56   :  { %v1424_v34 = vld [vmem:[%s1950_s1 + $0x2b0] ss:$8 sps:$4 sm:$0xff]   ;;  %v1429_v35 = vld [vmem:[%s1950_s1 + $0x2a4] ss:$8 sps:$4 sm:$0xff]   ;;  %v1427_v36 = vld [vmem:[%s1950_s1 + $0x2a0] ss:$8 sps:$4 sm:$0xff]  }
  0x57   :  { %772 = vmatpush1.bf16.msra.mxu0 %v1403_v20  ;;  %v1432_v37 = vld [vmem:[%s1950_s1 + $0x294] ss:$8 sps:$4 sm:$0xff]   ;;  %v1430_v38 = vld [vmem:[%s1950_s1 + $0x290] ss:$8 sps:$4 sm:$0xff]   ;;  %v1438_v39 = vld [vmem:[%s1950_s1 + $0x284] ss:$8 sps:$4 sm:$0xff]  }
  0x58   :  { %773 = vmatprep.subr.bf16.mxu0 %v1408_v21  ;;  %v1436_v40 = vld [vmem:[%s1950_s1 + $0x280] ss:$8 sps:$4 sm:$0xff]   ;;  %v1440_v41 = vld [vmem:[%s1949_s0 + $0x10] ss:$28 sps:$4 sm:$0xff]   ;;  %v137_v44 = vshrl.u32 %v136_v42, 7  ;;  %v1452_v42 = vld [vmem:[%s1954_s5 + $0x18] sm:$0xff]  }
  0x59   :  { %v134_v48 = vld [vmem:[%s1951_s2] sm:$0x3]  ;;  %s1494_s12 = smov [#allocation2]  }
  0x5a   :  { %v1852_v47 = vsub.s32 0, %v137_v44  ;;  %v1857_v49 = vsub.s32 1, %v137_v44  ;;  %v1454_v44 = vld [vmem:[%s1954_s5 + $0x10] sm:$0xff]   ;;  %s1124_s13 = sshll.u32 %s1494_s12, 4  ;;  %s1125_s13 = int_to_ptr.vmem [resolvable:$true] %s1124_s13 }
  0x5b   :  { %774 = vmatpush1.bf16.msra.mxu0 %v1406_v22  ;;  %p1476_p1 = scmp.lt.s32.totalorder %s1125_s13, %s1125_s13 }
  0x5c   :  { %775 = vmatprep.subr.bf16.mxu0 %v1411_v23  ;;  %v139_v52 = vrot.slane %v134_v48, %v1852_v47  ;;  %v143_v53 = vrot.slane %v134_v48, %v1857_v49  ;;  %v1457_v48 = vld [vmem:[%s1954_s5 + $0x40] sm:$0xff]  }
  0x5f   :  { %776 = vmatpush1.bf16.msra.mxu0 %v1409_v24 }
  0x60   :  { %777 = vmatprep.subr.bf16.mxu0 %v1414_v25 }
  0x63   :  { %778 = vmatpush2.bf16.msra.mxu0 %v1412_v26 }
  0x64   :  { %779 = vmatprep.subr.bf16.mxu0 %v1417_v27 }
  0x67   :  { %780 = vmatpush2.bf16.msra.mxu0 %v1415_v28 }
  0x68   :  { %781 = vmatprep.subr.bf16.mxu0 %v1420_v29 }
  0x6b   :  { %782 = vmatpush2.bf16.msra.mxu0 %v1418_v30 }
  0x6c   :  { %783 = vmatprep.subr.bf16.mxu0 %v1423_v31 }
  0x6f   :  { %784 = vmatpush2.bf16.msra.mxu0 %v1421_v32 }
  0x70   :  { %785 = vmatprep.subr.bf16.mxu0 %v1426_v33  ;;  %v1443_v33 = vld [vmem:[%s1954_s5 + $0x78] sm:$0xff]  }
  0x71   :  { %1260 = vmatprep.subr.bf16.mxu1 %v1443_v33 }
  0x73   :  { %786 = vmatpush2.bf16.msra.mxu0 %v1424_v34  ;;  %v1444_v34 = vld [vmem:[%s1954_s5 + $0x38] sm:$0xff]  }
  0x74   :  { %787 = vmatprep.subr.bf16.mxu0 %v1429_v35  ;;  %1261 = vmatpush3.bf16.msra.mxu1 %v1444_v34  ;;  %v1445_v35 = vld [vmem:[%s1954_s5 + $0x70] sm:$0xff]  }
  0x75   :  { %1262 = vmatprep.subr.bf16.mxu1 %v1445_v35 }
  0x77   :  { %788 = vmatpush2.bf16.msra.mxu0 %v1427_v36  ;;  %v1446_v36 = vld [vmem:[%s1954_s5 + $0x30] sm:$0xff]  }
  0x78   :  { %789 = vmatprep.subr.bf16.mxu0 %v1432_v37  ;;  %1263 = vmatpush3.bf16.msra.mxu1 %v1446_v36  ;;  %v1447_v37 = vld [vmem:[%s1954_s5 + $0x68] sm:$0xff]  }
  0x79   :  { %1264 = vmatprep.subr.bf16.mxu1 %v1447_v37 }
  0x7b   :  { %790 = vmatpush2.bf16.msra.mxu0 %v1430_v38  ;;  %v1448_v38 = vld [vmem:[%s1954_s5 + $0x28] sm:$0xff]  }
  0x7c   :  { %791 = vmatprep.subr.bf16.mxu0 %v1438_v39  ;;  %1265 = vmatpush3.bf16.msra.mxu1 %v1448_v38  ;;  %v1449_v39 = vld [vmem:[%s1954_s5 + $0x60] sm:$0xff]  }
  0x7d   :  { %1266 = vmatprep.subr.bf16.mxu1 %v1449_v39 }
  0x7f   :  { %792 = vmatpush2.bf16.msra.mxu0 %v1436_v40  ;;  %v1450_v40 = vld [vmem:[%s1954_s5 + $0x20] sm:$0xff]  }
  0x80   :  { %1267 = vmatpush3.bf16.msra.mxu1 %v1450_v40 }
  0x82   :  { %794 = vmatmul.mubr.bf16.vlgmr.msra.gmra.mxu0 %v1440_v41  ;;  %v1451_v41 = vld [vmem:[%s1954_s5 + $0x58] sm:$0xff]  }
  0x83   :  { %1268 = vmatprep.subr.bf16.mxu1 %v1451_v41 }
  0x84   :  { %1269 = vmatpush3.bf16.msra.mxu1 %v1452_v42 }
 0x102   :  { %v709_v45 = vpop.f32.mrf.mxu0 }
 0x103   :  { %v752_v43 = vpop.f32.mrf.mxu1  ;;  %v710_v56 = vadd.f32 %v709_v45, %v139_v52  ;;  %v1455_v45 = vld [vmem:[%s1954_s5 + $0x48] sm:$0xff]  }
 0x104   :  { %v711_v50 = vpop.f32.mrf.mxu0 }
 0x105   :  { %v754_v46 = vpop.f32.mrf.mxu1  ;;  %v712_v58 = vadd.f32 %v711_v50, %v143_v53  ;;  %v753_v60 = vadd.f32 %v752_v43, %v710_v56  ;;  %v1453_v43 = vld [vmem:[%s1954_s5 + $0x50] sm:$0xff]   ;;  %v1458_v50 = vld [vmem:[%s1954_s5] sm:$0xff]  }
 0x106   :  { %v713_v54 = vpop.f32.mrf.mxu0  ;;  %1270 = vmatprep.subr.bf16.mxu1 %v1453_v43 }
 0x107   :  { %v756_v51 = vpop.f32.mrf.mxu1  ;;  %v714_v61 = vadd.f32 %v713_v54, %v139_v52  ;;  %v755_v1 = vadd.f32 %v754_v46, %v712_v58  ;;  %1271 = vmatpush3.bf16.msra.mxu1 %v1454_v44  ;;  %v1456_v46 = vld [vmem:[%s1954_s5 + $0x8] sm:$0xff]  }
 0x108   :  { %v715_v59 = vpop.f32.mrf.mxu0  ;;  %1272 = vmatprep.subr.bf16.mxu1 %v1455_v45 }
 0x109   :  { %v758_v55 = vpop.f32.mrf.mxu1  ;;  %v716_v62 = vadd.f32 %v715_v59, %v143_v53  ;;  %v757_v4 = vadd.f32 %v756_v51, %v714_v61 }
 0x10b   :  { %v838_v57 = vpop.f32.mrf.mxu1  ;;  %v759_v7 = vadd.f32 %v758_v55, %v716_v62  ;;  %1273 = vmatpush3.bf16.msra.mxu1 %v1456_v46 }
 0x10c   :  { %1274 = vmatprep.subr.bf16.mxu1 %v1457_v48 }
 0x10d   :  { %v840_v63 = vpop.f32.mrf.mxu1 }
 0x10f   :  { %v842_v8 = vpop.f32.mrf.mxu1  ;;  %1275 = vmatpush3.bf16.msra.mxu1 %v1458_v50 }
 0x111   :  { %v844_v17 = vpop.f32.mrf.mxu1 }
 0x142   :  { %v795_v0 = vpop.f32.mrf.mxu0 }
 0x143   :  { %v796_v2 = vadd.f32 %v795_v0, %v753_v60 }
 0x144   :  { %v797_v3 = vpop.f32.mrf.mxu0 }
 0x145   :  { %v839_v5 = vadd.f32 %v838_v57, %v796_v2  ;;  %v798_v6 = vadd.f32 %v797_v3, %v755_v1  ;;  %v895_v1 = vld [vmem:[%s1952_s3] sm:$0x3] }
 0x146   :  { %v799_v9 = vpop.f32.mrf.mxu0 }
 0x147   :  { %v841_v10 = vadd.f32 %v840_v63, %v798_v6  ;;  %v800_v11 = vadd.f32 %v799_v9, %v757_v4  ;;  %vm847_vm1 = vcmp.ge.f32.partialorder %v839_v5, 0.0  ;;  %v851_v12 = vmul.f32 0.2, %v839_v5 }
 0x148   :  { %v801_v13 = vpop.f32.mrf.mxu0  ;;  %v900_v6 = vrot.slane %v895_v1, %v1852_v47 }
 0x149   :  { %v843_v14 = vadd.f32 %v842_v8, %v800_v11  ;;  %v802_v15 = vadd.f32 %v801_v13, %v759_v7  ;;  %vm848_vm2 = vcmp.ge.f32.partialorder %v841_v10, 0.0  ;;  %v852_v16 = vmul.f32 0.2, %v841_v10  ;;  %v911_v8 = vld [vmem:[%s1953_s4] sm:$0x3] }
 0x14a   :  { %v1861_v18 = vsel %vm847_vm1, %v839_v5, %v851_v12  ;;  %v904_v7 = vrot.slane %v895_v1, %v1857_v49  ;;  %v916_v13 = vrot.slane %v911_v8, %v1852_v47  ;;  %v1241_v47 = vld [vmem:[%s1955_s6] ss:$0 sm:$0xff]  ;;  %s1471_s6 = scalar_lea.vmem %s1125_s13, 256 }
 0x14b   :  { %v853_v19 = vmul.f32 0.2, %v843_v14  ;;  %v845_v20 = vadd.f32 %v844_v17, %v802_v15  ;;  %v1863_v21 = vsel %vm848_vm2, %v841_v10, %v852_v16  ;;  %v865_v23 = vmul.f32 %v1861_v18, %v1861_v18  ;;  %p1472_p0 = scmp.ne.s32.totalorder %s1125_s13, %s1471_s6  ;;  %p1477_p2 = scmp.lt.s32.totalorder %s1471_s6, %s1471_s6 }
 0x14c   :  { %v859_v22 = vadd.f32 %v1863_v21, %v1861_v18  ;;  %v866_v24 = vmul.f32 %v1863_v21, %v1863_v21  ;;  %vm849_vm3 = vcmp.ge.f32.partialorder %v843_v14, 0.0 }
 0x14d   :  { %v854_v25 = vmul.f32 0.2, %v845_v20  ;;  %vm850_vm4 = vcmp.ge.f32.partialorder %v845_v20, 0.0  ;;  %v1871_v26 = vsel %vm849_vm3, %v843_v14, %v853_v19  ;;  %v920_v14 = vrot.slane %v911_v8, %v1857_v49  ;;  %p1478_p3 = por %p1477_p2, %p1476_p1 }
 0x14e   :  { %860 = vadd.xlane.f32.xlu0 %v859_v22  ;;  %v869_v27 = vadd.f32 %v866_v24, %v865_v23  ;;  %v867_v30 = vmul.f32 %v1871_v26, %v1871_v26 }
 0x14f   :  { %v1873_v28 = vsel %vm850_vm4, %v845_v20, %v854_v25  ;;  %p1479_p4 = pnand %p1478_p3, %p1472_p0 }
 0x150   :  { %870 = vadd.xlane.f32.xlu1 %v869_v27  ;;  %v862_v29 = vadd.f32 %v1873_v28, %v1871_v26  ;;  %v868_v31 = vmul.f32 %v1873_v28, %v1873_v28 }
 0x152   :  { %863 = vadd.xlane.f32.xlu0 %v862_v29  ;;  %v872_v32 = vadd.f32 %v868_v31, %v867_v30 }
 0x154   :  { %873 = vadd.xlane.f32.xlu1 %v872_v32 }
 0x1d7   :  { %v861_v51 = vpop.xlane.xlu0 %860 }
 0x1d8   :  { %v875_v52 = vmul.f32 0.005, %v861_v51 }
 0x1d9   :  { %v871_v53 = vpop.xlane.xlu1 %870 }
 0x1da   :  { %v877_v54 = vmul.f32 0.005, %v871_v53  ;;  %v879_v55 = vmul.f32 %v875_v52, %v875_v52  ;;  %v887_v3 = vsub.f32 %v1861_v18, %v875_v52  ;;  %v888_v4 = vsub.f32 %v1863_v21, %v875_v52 }
 0x1db   :  { %v864_v56 = vpop.xlane.xlu0 %863 }
 0x1dc   :  { %v881_v57 = vsub.f32 %v877_v54, %v879_v55  ;;  %v876_v58 = vmul.f32 0.005, %v864_v56 }
 0x1dd   :  { %v874_v59 = vpop.xlane.xlu1 %873 }
 0x1de   :  { %v883_v60 = vadd.f32 1e-05, %v881_v57  ;;  %v878_v61 = vmul.f32 0.005, %v874_v59  ;;  %v880_v62 = vmul.f32 %v876_v58, %v876_v58  ;;  %v889_v10 = vsub.f32 %v1871_v26, %v876_v58 }
 0x1df   :  { %v890_v11 = vsub.f32 %v1873_v28, %v876_v58 }
 0x1e0   :  { %1459 = vrsqrt.f32 %v883_v60  ;;  %v882_v63 = vsub.f32 %v878_v61, %v880_v62 }
 0x1e2   :  { %v884_v0 = vadd.f32 1e-05, %v882_v63 }
 0x1e4   :  { %1461 = vrsqrt.f32 %v884_v0 }
 0x1ed   :  { %v1460_v2 = vpop.eup %1459 }
 0x1ee   :  { %v892_v5 = vmul.f32 %v1460_v2, %v888_v4  ;;  %v891_v9 = vmul.f32 %v1460_v2, %v887_v3 }
 0x1f0   :  { %v908_v16 = vmul.f32 %v904_v7, %v892_v5  ;;  %v907_v18 = vmul.f32 %v900_v6, %v891_v9 }
 0x1f1   :  { %v1462_v12 = vpop.eup %1461 }
 0x1f2   :  { %v894_v15 = vmul.f32 %v1462_v12, %v890_v11  ;;  %v893_v17 = vmul.f32 %v1462_v12, %v889_v10  ;;  %v924_v21 = vadd.f32 %v920_v14, %v908_v16  ;;  %v923_v23 = vadd.f32 %v916_v13, %v907_v18 }
 0x1f4   :  { %v910_v19 = vmul.f32 %v904_v7, %v894_v15  ;;  %v909_v20 = vmul.f32 %v900_v6, %v893_v17 }
 0x1f6   :  { %v926_v22 = vadd.f32 %v920_v14, %v910_v19  ;;  %v925_v24 = vadd.f32 %v916_v13, %v909_v20 }
 0x1f8   :  { %v928_v25 = vpack.c.bf16 %v926_v22, %v924_v21  ;;  %v927_v27 = vpack.c.bf16 %v925_v24, %v923_v23 }
 0x1fa   :  { %1096 = vmatprep.mubr.bf16.mxu1 %v928_v25 }
 0x1fb   :  { %1097 = vmatmul.mubr.bf16.vlgmr.msra.gmra.mxu1 %v927_v27 }
 0x2bb   :  { %v1276_v26 = vpop.f32.mrf.mxu1 }
 0x2bd   :  { %v1277_v49 = vpop.f32.mrf.mxu1 }
 0x2be   :  { %v1278_v28 = vadd.f32 %v1277_v49, %v1276_v26 }
 0x2bf   :  { %v1279_v29 = vpop.f32.mrf.mxu1 }
 0x2c0   :  { %v1099_v30 = vadd.f32 %v1278_v28, %v1241_v47 }
 0x2c1   :  { %v1280_v31 = vpop.f32.mrf.mxu1 }
 0x2c2   :  { %v1258_v32 = vmul.f32 -1.442695, %v1099_v30  ;;  %v1281_v33 = vadd.f32 %v1280_v31, %v1279_v29 }
 0x2c4   :  { %1463 = vpow2.f32 %v1258_v32  ;;  %v1102_v34 = vadd.f32 %v1281_v33, %v1241_v47 }
 0x2c6   :  { %v1259_v35 = vmul.f32 -1.442695, %v1102_v34 }
 0x2c8   :  { %1465 = vpow2.f32 %v1259_v35 }
 0x2d1   :  { %v1464_v36 = vpop.eup %1463 }
 0x2d2   :  { %v1111_v37 = vadd.f32 1.0, %v1464_v36 }
 0x2d4   :  { %1467 = vrcp.f32 %v1111_v37 }
 0x2d5   :  { %v1466_v38 = vpop.eup %1465 }
 0x2d6   :  { %v1112_v39 = vadd.f32 1.0, %v1466_v38 }
 0x2d8   :  { %1469 = vrcp.f32 %v1112_v39 }
 0x2e1   :  { %v1468_v40 = vpop.eup %1467 }
 0x2e2   :  { %1117 = vst [vmem:[#allocation2] sm:$0xff] %v1468_v40 }
 0x2e5   :  { %v1470_v41 = vpop.eup %1469 }
 0x2e6   :  { %1118 = vst [vmem:[#allocation2 + $0x8] sm:$0xff] %v1470_v41 }
 0x2e7   :  { %1482 = shalt.err (!%p1479_p4)
}
 0x2e8   :  { %s1495_s14 = smov 128   ;;  %s1496_s15 = smov 8  }
 0x2e9   :  { %1130 = dma.vmem_to_hbm [thread:$0]  %s1125_s13, 256, %s1956_s7, [#allocation3], %s1495_s14, %s1495_s14, %s1496_s15  }
 0x2ea   :  { %1491 = dma.done.wait [#allocation3], 256  }
 0x2eb   :  { %1492 = vsyncadd [#allocation3], 4294967040 }
 0x2ec   :  { %1134 = vsyncpa [#allocation3], 1 }

</bundles_post_ra>
